<compile_context>
chip_gen: v7x
topology: tpu7x:2x2x1
jax: 0.10.0
libtpu: 0.0.40
codegen_flags: <defaults>
</compile_context>

<pallas_src>
import jax
import jax.numpy as jnp
from jax.experimental import pallas as pl
from jax.experimental.pallas import tpu as pltpu


def caption_attention_kernel(cf_ref, dh_ref, mask_ref,
                             w1_ref, w2_ref, b12_ref, w3_ref,
                             out_ref):
    bt, L, F2 = cf_ref.shape
    A = w1_ref.shape[1]

    cf = cf_ref[...]                                  # (bt, L, F2)
    cf_f32 = cf.astype(jnp.float32)

    # att1_c = cap_features_att(caption_features): one (bt*L, F2) @ (F2, A) MXU matmul.
    att1 = jnp.dot(cf.reshape(bt * L, F2), w1_ref[...],
                   preferred_element_type=jnp.float32).reshape(bt, L, A)

    # att2_c = cap_decoder_att(decoder_hidden), with b1 + b2 pre-fused into one bias.
    att2 = jnp.dot(dh_ref[...], w2_ref[...],
                   preferred_element_type=jnp.float32) + b12_ref[...]    # (bt, A)

    # tanh(att1 + att2.unsqueeze(1))  -- tanh runs on the EUP slot.
    s = jnp.tanh(att1 + att2[:, None, :])             # (bt, L, A), f32

    # cap_full_att(...): (A -> 1) projection as VPU multiply + lane reduction.
    # b3 is omitted: softmax is shift-invariant so it cancels exactly.
    att = jnp.sum(s * w3_ref[...], axis=-1)           # (bt, L), L on lanes

    # masked_fill(mask == 0, -1e10) — exact 0-compare matches the PyTorch module.
    valid = mask_ref[...] != 0.0                      # (bt, L)
    att = jnp.where(valid, att, jnp.float32(-1e10))

    # Numerically stable softmax over L (lane axis).
    m = jnp.max(att, axis=-1, keepdims=True)          # (bt, 1)
    e = jnp.exp(att - m)                              # (bt, L)
    denom = jnp.sum(e, axis=-1, keepdims=True)        # (bt, 1)
    inv = pl.reciprocal(denom, approx=True)           # EUP slot (otherwise idle)
    inv = inv * (2.0 - denom * inv)                   # one Newton step -> f32-accurate
    alpha = e * inv                                   # (bt, L)

    # context = sum_L caption_features * alpha  -> lane-dense (bt, F2) store.
    out_ref[...] = jnp.sum(cf_f32 * alpha[:, :, None], axis=1)


def _choose_b_tile(B, L, F2, itemsize, vmem_budget_bytes=8 * 1024 * 1024):
    """Pick a batch tile: as large as possible (amortize per-step overhead),
    multiple of 8 (sublane-aligned), bounded so the double-buffered
    caption_features block stays within a VMEM budget, and when B is big keep
    >= 2 grid steps so both v7x TensorCores get work."""
    if B <= 8:
        return 8
    per_row_bytes = 2 * L * F2 * itemsize            # x2 for double-buffering
    max_by_vmem = max(8, vmem_budget_bytes // max(per_row_bytes, 1))
    target = min(pl.cdiv(B, 2), 256, max_by_vmem)    # >=2 steps, cap per-step VMEM
    return max(8, (target // 8) * 8)


def caption_attention(caption_features, decoder_hidden, prev_caption_mask, params,
                      *, b_tile=None, mxu_dtype=jnp.float32):
    B, L, F2 = caption_features.shape
    D = decoder_hidden.shape[-1]
    A = params["w1"].shape[1]

    if b_tile is None:
        b_tile = _choose_b_tile(B, L, F2, jnp.dtype(mxu_dtype).itemsize)
    B_pad = pl.cdiv(B, b_tile) * b_tile
    num_tiles = B_pad // b_tile

    cf = caption_features.astype(mxu_dtype)
    dh = decoder_hidden.astype(mxu_dtype)
    mask = prev_caption_mask.astype(jnp.float32)      # lane-dense (B, L)

    if B_pad != B:
        cf = jnp.pad(cf, ((0, B_pad - B), (0, 0), (0, 0)))
        dh = jnp.pad(dh, ((0, B_pad - B), (0, 0)))
        mask = jnp.pad(mask, ((0, B_pad - B), (0, 0)))  # padded rows fully masked

    w1 = params["w1"].astype(mxu_dtype)                          # (F2, A)
    w2 = params["w2"].astype(mxu_dtype)                          # (D, A)
    b12 = (params["b1"] + params["b2"]).reshape(1, A).astype(jnp.float32)
    w3row = params["w3"].reshape(1, A).astype(jnp.float32)       # (A,1) -> (1, A)
    # b3 intentionally dropped (cancels in softmax).

    out = pl.pallas_call(
        caption_attention_kernel,
        out_shape=jax.ShapeDtypeStruct((B_pad, F2), jnp.float32),
        grid_spec=pltpu.PrefetchScalarGridSpec(
            num_scalar_prefetch=0,
            grid=(num_tiles,),
            in_specs=[
                pl.BlockSpec((b_tile, L, F2), lambda i: (i, 0, 0)),  # caption_features
                pl.BlockSpec((b_tile, D), lambda i: (i, 0)),         # decoder_hidden
                pl.BlockSpec((b_tile, L), lambda i: (i, 0)),         # mask (lane-dense)
                pl.BlockSpec((F2, A), lambda i: (0, 0)),             # W1
                pl.BlockSpec((D, A), lambda i: (0, 0)),              # W2
                pl.BlockSpec((1, A), lambda i: (0, 0)),              # b1 + b2 fused
                pl.BlockSpec((1, A), lambda i: (0, 0)),              # w3 as a row
            ],
            out_specs=pl.BlockSpec((b_tile, F2), lambda i: (i, 0)),
        ),
        compiler_params=pltpu.CompilerParams(
            dimension_semantics=("parallel",)),
    )(cf, dh, mask, w1, w2, b12, w3row)
    return out[:B]


def reference_forward(cf, dh, mask, params):
    """Pure-JAX replica of the PyTorch forward for validation."""
    att1 = cf @ params["w1"] + params["b1"]                       # (B, L, A)
    att2 = dh @ params["w2"] + params["b2"]                       # (B, A)
    att = jnp.squeeze(jnp.tanh(att1 + att2[:, None, :]) @ params["w3"] + params["b3"], -1)
    att = jnp.where(mask == 0, -1e10, att)
    alpha = jax.nn.softmax(att, axis=1)
    return jnp.sum(cf * alpha[:, :, None], axis=1)


if __name__ == "__main__":
    # Small shapes consistent with the module.
    B = 2                      # batch
    L = 8                      # max_seq_length
    CAP_DIM = 16               # caption_features_dim -> features come in as 2*CAP_DIM
    F2 = 2 * CAP_DIM           # 32
    D = 24                     # decoder_dim
    A = 32                     # attention_dim

    key = jax.random.PRNGKey(0)
    k_cf, k_dh, k_w1, k_b1, k_w2, k_b2, k_w3, k_b3 = jax.random.split(key, 8)

    caption_features = jax.random.normal(k_cf, (B, L, F2), jnp.float32)
    decoder_hidden = jax.random.normal(k_dh, (B, D), jnp.float32)
    # mask: first sequence fully valid, second sequence valid for 5 tokens
    lengths = jnp.array([L, 5])
    prev_caption_mask = (jnp.arange(L)[None, :] < lengths[:, None]).astype(jnp.float32)

    # Deterministic parameter init (Linear weights stored as (in, out)).
    params = {
        "w1": 0.1 * jax.random.normal(k_w1, (F2, A), jnp.float32),
        "b1": 0.1 * jax.random.normal(k_b1, (A,), jnp.float32),
        "w2": 0.1 * jax.random.normal(k_w2, (D, A), jnp.float32),
        "b2": 0.1 * jax.random.normal(k_b2, (A,), jnp.float32),
        "w3": 0.1 * jax.random.normal(k_w3, (A, 1), jnp.float32),
        "b3": 0.1 * jax.random.normal(k_b3, (1,), jnp.float32),
    }

    context = caption_attention(caption_features, decoder_hidden, prev_caption_mask, params)
    context = jax.block_until_ready(context)

    ref = reference_forward(caption_features, decoder_hidden, prev_caption_mask, params)
    assert context.shape == (B, F2)
    assert jnp.allclose(context, ref, rtol=1e-5, atol=1e-5), "mismatch vs reference"

    print("KERNEL_OK")
</pallas_src>

<mosaic_0001>
module attributes {stable_mosaic.version = 11 : i64} {
  func.func @caption_attention_kernel(%arg0: i32, %arg1: memref<8x8x32xf32, #tpu.memory_space<vmem>>, %arg2: memref<8x24xf32, #tpu.memory_space<vmem>>, %arg3: memref<8x8xf32, #tpu.memory_space<vmem>>, %arg4: memref<32x32xf32, #tpu.memory_space<vmem>>, %arg5: memref<24x32xf32, #tpu.memory_space<vmem>>, %arg6: memref<1x32xf32, #tpu.memory_space<vmem>>, %arg7: memref<1x32xf32, #tpu.memory_space<vmem>>, %arg8: memref<8x32xf32, #tpu.memory_space<vmem>>) attributes {dimension_semantics = [#tpu.dimension_semantics<parallel>], iteration_bounds = array<i64: 1>, scalar_prefetch = 0 : i64, scratch_operands = 0 : i64, tpu.core_type = #tpu.core_type<tc>, window_params = [{transform_indices = @transform_0, window_bounds = array<i64: 8, 8, 32>}, {transform_indices = @transform_1, window_bounds = array<i64: 8, 24>}, {transform_indices = @transform_2, window_bounds = array<i64: 8, 8>}, {pipeline_mode = #tpu.pipeline_mode<synchronous>, transform_indices = @transform_3, window_bounds = array<i64: 32, 32>}, {pipeline_mode = #tpu.pipeline_mode<synchronous>, transform_indices = @transform_4, window_bounds = array<i64: 24, 32>}, {pipeline_mode = #tpu.pipeline_mode<synchronous>, transform_indices = @transform_5, window_bounds = array<i64: 1, 32>}, {pipeline_mode = #tpu.pipeline_mode<synchronous>, transform_indices = @transform_6, window_bounds = array<i64: 1, 32>}, {transform_indices = @transform_7, window_bounds = array<i64: 8, 32>}]} {
    %c0 = arith.constant 0 : index
    %c0_0 = arith.constant 0 : index
    %c0_1 = arith.constant 0 : index
    %0 = vector.load %arg1[%c0, %c0_0, %c0_1] : memref<8x8x32xf32, #tpu.memory_space<vmem>>, vector<8x8x32xf32>
    %1 = vector.shape_cast %0 : vector<8x8x32xf32> to vector<64x32xf32>
    %c0_2 = arith.constant 0 : index
    %c0_3 = arith.constant 0 : index
    %2 = vector.load %arg4[%c0_2, %c0_3] : memref<32x32xf32, #tpu.memory_space<vmem>>, vector<32x32xf32>
    %cst = arith.constant dense<0.000000e+00> : vector<64x32xf32>
    %3 = tpu.matmul %1, %2, %cst {dimension_numbers = #tpu.dot_dimension_numbers<[1], [0], [0], [1], [0, 0, 1, 1], [], []>} : vector<64x32xf32>, vector<32x32xf32>, vector<64x32xf32> -> vector<64x32xf32>
    %4 = vector.shape_cast %3 : vector<64x32xf32> to vector<8x8x32xf32>
    %c0_4 = arith.constant 0 : index
    %c0_5 = arith.constant 0 : index
    %5 = vector.load %arg2[%c0_4, %c0_5] : memref<8x24xf32, #tpu.memory_space<vmem>>, vector<8x24xf32>
    %c0_6 = arith.constant 0 : index
    %c0_7 = arith.constant 0 : index
    %6 = vector.load %arg5[%c0_6, %c0_7] : memref<24x32xf32, #tpu.memory_space<vmem>>, vector<24x32xf32>
    %cst_8 = arith.constant dense<0.000000e+00> : vector<8x32xf32>
    %7 = tpu.matmul %5, %6, %cst_8 {dimension_numbers = #tpu.dot_dimension_numbers<[1], [0], [0], [1], [0, 0, 1, 1], [], []>} : vector<8x24xf32>, vector<24x32xf32>, vector<8x32xf32> -> vector<8x32xf32>
    %c0_9 = arith.constant 0 : index
    %c0_10 = arith.constant 0 : index
    %8 = vector.load %arg6[%c0_9, %c0_10] : memref<1x32xf32, #tpu.memory_space<vmem>>, vector<1x32xf32>
    %9 = vector.broadcast %8 : vector<1x32xf32> to vector<8x32xf32>
    %10 = arith.addf %7, %9 : vector<8x32xf32>
    %11 = vector.shape_cast %10 : vector<8x32xf32> to vector<8x1x32xf32>
    %12 = vector.broadcast %11 : vector<8x1x32xf32> to vector<8x8x32xf32>
    %13 = arith.addf %4, %12 : vector<8x8x32xf32>
    %14 = math.tanh %13 : vector<8x8x32xf32>
    %c0_11 = arith.constant 0 : index
    %c0_12 = arith.constant 0 : index
    %15 = vector.load %arg7[%c0_11, %c0_12] : memref<1x32xf32, #tpu.memory_space<vmem>>, vector<1x32xf32>
    %16 = vector.shape_cast %15 : vector<1x32xf32> to vector<1x1x32xf32>
    %17 = vector.broadcast %16 : vector<1x1x32xf32> to vector<8x8x32xf32>
    %18 = arith.mulf %14, %17 : vector<8x8x32xf32>
    %cst_13 = arith.constant dense<0.000000e+00> : vector<8x8xf32>
    %19 = vector.multi_reduction <add>, %18, %cst_13 [2] : vector<8x8x32xf32> to vector<8x8xf32>
    %c0_14 = arith.constant 0 : index
    %c0_15 = arith.constant 0 : index
    %20 = vector.load %arg3[%c0_14, %c0_15] : memref<8x8xf32, #tpu.memory_space<vmem>>, vector<8x8xf32>
    %cst_16 = arith.constant 0.000000e+00 : f32
    %21 = vector.broadcast %cst_16 : f32 to vector<8x8xf32>
    %22 = arith.cmpf one, %20, %21 : vector<8x8xf32>
    %cst_17 = arith.constant -1.000000e+10 : f32
    %23 = vector.broadcast %cst_17 : f32 to vector<8x8xf32>
    %24 = arith.select %22, %19, %23 : vector<8x8xi1>, vector<8x8xf32>
    %cst_18 = arith.constant dense<0xFF800000> : vector<8xf32>
    %25 = vector.multi_reduction <maximumf>, %24, %cst_18 [1] : vector<8x8xf32> to vector<8xf32>
    %26 = vector.shape_cast %25 : vector<8xf32> to vector<8x1xf32>
    %27 = vector.broadcast %26 : vector<8x1xf32> to vector<8x8xf32>
    %28 = arith.subf %24, %27 : vector<8x8xf32>
    %29 = math.exp %28 : vector<8x8xf32>
    %cst_19 = arith.constant dense<0.000000e+00> : vector<8xf32>
    %30 = vector.multi_reduction <add>, %29, %cst_19 [1] : vector<8x8xf32> to vector<8xf32>
    %31 = vector.shape_cast %30 : vector<8xf32> to vector<8x1xf32>
    %32 = tpu.reciprocal %31 {approx = true} : vector<8x1xf32> -> vector<8x1xf32>
    %33 = arith.mulf %31, %32 : vector<8x1xf32>
    %cst_20 = arith.constant 2.000000e+00 : f32
    %34 = vector.broadcast %cst_20 : f32 to vector<8x1xf32>
    %35 = arith.subf %34, %33 : vector<8x1xf32>
    %36 = arith.mulf %32, %35 : vector<8x1xf32>
    %37 = vector.broadcast %36 : vector<8x1xf32> to vector<8x8xf32>
    %38 = arith.mulf %29, %37 : vector<8x8xf32>
    %39 = vector.shape_cast %38 : vector<8x8xf32> to vector<8x8x1xf32>
    %40 = vector.broadcast %39 : vector<8x8x1xf32> to vector<8x8x32xf32>
    %41 = arith.mulf %0, %40 : vector<8x8x32xf32>
    %cst_21 = arith.constant dense<0.000000e+00> : vector<8x32xf32>
    %42 = vector.multi_reduction <add>, %41, %cst_21 [1] : vector<8x8x32xf32> to vector<8x32xf32>
    %c0_22 = arith.constant 0 : index
    %c0_23 = arith.constant 0 : index
    %43 = vector.load %arg8[%c0_22, %c0_23] : memref<8x32xf32, #tpu.memory_space<vmem>>, vector<8x32xf32>
    tpu.vector_store %arg8[%c0_22, %c0_23], %42 {strides = array<i32>} : memref<8x32xf32, #tpu.memory_space<vmem>>, vector<8x32xf32>,
    return
  }
  func.func @transform_0(%arg0: i32) -> (i32, i32, i32) {
    %c0_i32 = arith.constant 0 : i32
    %c0_i32_0 = arith.constant 0 : i32
    %c0_i32_1 = arith.constant 0 : i32
    return %arg0, %c0_i32, %c0_i32_0 : i32, i32, i32
  }
  func.func @transform_1(%arg0: i32) -> (i32, i32) {
    %c0_i32 = arith.constant 0 : i32
    %c0_i32_0 = arith.constant 0 : i32
    return %arg0, %c0_i32 : i32, i32
  }
  func.func @transform_2(%arg0: i32) -> (i32, i32) {
    %c0_i32 = arith.constant 0 : i32
    %c0_i32_0 = arith.constant 0 : i32
    return %arg0, %c0_i32 : i32, i32
  }
  func.func @transform_3(%arg0: i32) -> (i32, i32) {
    %c0_i32 = arith.constant 0 : i32
    %c0_i32_0 = arith.constant 0 : i32
    %c0_i32_1 = arith.constant 0 : i32
    return %c0_i32, %c0_i32_0 : i32, i32
  }
  func.func @transform_4(%arg0: i32) -> (i32, i32) {
    %c0_i32 = arith.constant 0 : i32
    %c0_i32_0 = arith.constant 0 : i32
    %c0_i32_1 = arith.constant 0 : i32
    return %c0_i32, %c0_i32_0 : i32, i32
  }
  func.func @transform_5(%arg0: i32) -> (i32, i32) {
    %c0_i32 = arith.constant 0 : i32
    %c0_i32_0 = arith.constant 0 : i32
    %c0_i32_1 = arith.constant 0 : i32
    return %c0_i32, %c0_i32_0 : i32, i32
  }
  func.func @transform_6(%arg0: i32) -> (i32, i32) {
    %c0_i32 = arith.constant 0 : i32
    %c0_i32_0 = arith.constant 0 : i32
    %c0_i32_1 = arith.constant 0 : i32
    return %c0_i32, %c0_i32_0 : i32, i32
  }
  func.func @transform_7(%arg0: i32) -> (i32, i32) {
    %c0_i32 = arith.constant 0 : i32
    %c0_i32_0 = arith.constant 0 : i32
    return %arg0, %c0_i32 : i32, i32
  }
}

</mosaic_0001>

<bundles_post_ra>
// kernel: tpu_custom_call.1
= control target key start
LH: loop header
LB: loop body
LE: loop exit
PB: predicated region body
PF: predicated region fallthrough
CT: control target
= control target key end

     0   :  { %12 = vsyncpa [#allocation3], 0  ;;  %s1170_s0 = inlined_call_operand.hbm [shape: f32[8,8,32], index: 0, kind: input, shape index: {}]   ;;  %s1171_s1 = inlined_call_operand.hbm [shape: f32[8,24], index: 1, kind: input, shape index: {}]   ;;  %s1172_s2 = inlined_call_operand.hbm [shape: f32[8,8], index: 2, kind: input, shape index: {}]   ;;  %s1173_s3 = inlined_call_operand.hbm [shape: f32[32,32], index: 3, kind: input, shape index: {}]   ;;  %s1174_s4 = inlined_call_operand.hbm [shape: f32[24,32], index: 4, kind: input, shape index: {}]   ;;  %s1175_s5 = inlined_call_operand.vmem [shape: f32[1,32], index: 5, kind: input, shape index: {}]   ;;  %s1176_s6 = inlined_call_operand.vmem [shape: f32[1,32], index: 6, kind: input, shape index: {}]   ;;  %s1177_s7 = inlined_call_operand.hbm [shape: f32[8,32], index: 7, kind: output, shape index: {}]  }
   0x1   :  { %13 = vsyncpa [#allocation6], 0 }
   0x2   :  { %14 = vsyncpa [#allocation9], 0 }
   0x3   :  { %15 = vsyncpa [#allocation4], 0  ;;  %s935_s24 = smov [#allocation5]   ;;  %s795_s28 = scalar_lea.hbm %s1171_s1, 128 }
   0x4   :  { %s34_s25 = sshll.u32 %s935_s24, 4  ;;  %p796_p0 = scmp.ne.s32.totalorder %s1171_s1, %s795_s28  ;;  %s35_s25 = int_to_ptr.vmem [resolvable:$true] %s34_s25 }
   0x5   :  { %p799_p1 = scmp.lt.u32.totalorder %s795_s28, %s1171_s1 }
   0x7   :  { %p801_p2 = pnand %p799_p1, %p796_p0 }
   0x9   :  { %804 = shalt.err (!%p801_p2)
}
   0xa   :  { %s805_s10 = scalar_lea.vmem %s35_s25, 128  ;;  %p810_p4 = scmp.lt.s32.totalorder %s35_s25, %s35_s25 }
   0xb   :  { %p806_p3 = scmp.ne.s32.totalorder %s35_s25, %s805_s10  ;;  %p811_p5 = scmp.lt.s32.totalorder %s805_s10, %s805_s10 }
   0xd   :  { %p812_p6 = por %p811_p5, %p810_p4 }
   0xf   :  { %p813_p7 = pnand %p812_p6, %p806_p3 }
  0x11   :  { %816 = shalt.err (!%p813_p7)
}
  0x12   :  { %37 = dma.hbm_to_vmem [thread:$0]  %s1171_s1, 128, %s35_s25, [#allocation6]  }
  0x13   :  { %s936_s13 = smov [#allocation8]   ;;  %s937_s15 = smov [#allocation2]  }
  0x14   :  { %s53_s14 = sshll.u32 %s936_s13, 4  ;;  %s21_s16 = sshll.u32 %s937_s15, 4  ;;  %s54_s14 = int_to_ptr.vmem [resolvable:$true] %s53_s14  ;;  %s22_s16 = int_to_ptr.vmem [resolvable:$true] %s21_s16 }
  0x15   :  { %s817_s19 = scalar_lea.hbm %s1173_s3, 512 }
  0x16   :  { %p818_p8 = scmp.ne.s32.totalorder %s1173_s3, %s817_s19  ;;  %p821_p9 = scmp.lt.u32.totalorder %s817_s19, %s1173_s3 }
  0x18   :  { %p823_p10 = pnand %p821_p9, %p818_p8 }
  0x1a   :  { %826 = shalt.err (!%p823_p10)
}
  0x1b   :  { %s827_s1 = scalar_lea.vmem %s54_s14, 512  ;;  %p832_p12 = scmp.lt.s32.totalorder %s54_s14, %s54_s14 }
  0x1c   :  { %p828_p11 = scmp.ne.s32.totalorder %s54_s14, %s827_s1  ;;  %p833_p13 = scmp.lt.s32.totalorder %s827_s1, %s827_s1 }
  0x1e   :  { %p834_p0 = por %p833_p13, %p832_p12 }
  0x20   :  { %p835_p1 = pnand %p834_p0, %p828_p11 }
  0x22   :  { %838 = shalt.err (!%p835_p1)
}
  0x23   :  { %s938_s24 = smov 128   ;;  %s939_s25 = smov 8  }
  0x24   :  { %59 = dma.hbm_to_vmem [thread:$0]  %s1173_s3, 512, %s54_s14, [#allocation9], %s938_s24, %s938_s24, %s939_s25  }
  0x25   :  { %s839_s30 = scalar_lea.hbm %s1170_s0, 1024 }
  0x26   :  { %p840_p2 = scmp.ne.s32.totalorder %s1170_s0, %s839_s30  ;;  %p843_p3 = scmp.lt.u32.totalorder %s839_s30, %s1170_s0 }
  0x28   :  { %p845_p4 = pnand %p843_p3, %p840_p2 }
  0x2a   :  { %848 = shalt.err (!%p845_p4)
}
  0x2b   :  { %s849_s12 = scalar_lea.vmem %s22_s16, 1024  ;;  %p854_p6 = scmp.lt.s32.totalorder %s22_s16, %s22_s16 }
  0x2c   :  { %p850_p5 = scmp.ne.s32.totalorder %s22_s16, %s849_s12  ;;  %p855_p7 = scmp.lt.s32.totalorder %s849_s12, %s849_s12 }
  0x2e   :  { %p856_p8 = por %p855_p7, %p854_p6 }
  0x30   :  { %p857_p9 = pnand %p856_p8, %p850_p5 }
  0x32   :  { %860 = shalt.err (!%p857_p9)
}
  0x33   :  { %27 = dma.hbm_to_vmem [thread:$0]  %s1170_s0, 1024, %s22_s16, [#allocation3], %s938_s24, %s938_s24, %s939_s25  }
  0x34   :  { %s940_s14 = smov [#allocation7]   ;;  %s941_s17 = smov [#allocation10]  }
  0x35   :  { %s44_s15 = sshll.u32 %s940_s14, 4  ;;  %s65_s18 = sshll.u32 %s941_s17, 4  ;;  %s45_s15 = int_to_ptr.vmem [resolvable:$true] %s44_s15  ;;  %s66_s18 = int_to_ptr.vmem [resolvable:$true] %s65_s18 }
  0x36   :  { %s861_s21 = scalar_lea.hbm %s1172_s2, 128 }
  0x37   :  { %p862_p10 = scmp.ne.s32.totalorder %s1172_s2, %s861_s21  ;;  %p865_p11 = scmp.lt.u32.totalorder %s861_s21, %s1172_s2 }
  0x39   :  { %p867_p12 = pnand %p865_p11, %p862_p10 }
  0x3b   :  { %870 = shalt.err (!%p867_p12)
}
  0x3c   :  { %s871_s0 = scalar_lea.vmem %s45_s15, 128  ;;  %p876_p0 = scmp.lt.s32.totalorder %s45_s15, %s45_s15 }
  0x3d   :  { %p872_p13 = scmp.ne.s32.totalorder %s45_s15, %s871_s0  ;;  %p877_p1 = scmp.lt.s32.totalorder %s871_s0, %s871_s0 }
  0x3f   :  { %p878_p2 = por %p877_p1, %p876_p0 }
  0x41   :  { %p879_p3 = pnand %p878_p2, %p872_p13 }
  0x43   :  { %882 = shalt.err (!%p879_p3)
}
  0x44   :  { %47 = dma.hbm_to_vmem [thread:$0]  %s1172_s2, 128, %s45_s15, [#allocation6]  }
  0x45   :  { %s883_s30 = scalar_lea.hbm %s1174_s4, 384 }
  0x46   :  { %p884_p4 = scmp.ne.s32.totalorder %s1174_s4, %s883_s30  ;;  %p887_p5 = scmp.lt.u32.totalorder %s883_s30, %s1174_s4 }
  0x48   :  { %p889_p6 = pnand %p887_p5, %p884_p4 }
  0x4a   :  { %892 = shalt.err (!%p889_p6)
}
  0x4b   :  { %s893_s12 = scalar_lea.vmem %s66_s18, 384  ;;  %p898_p8 = scmp.lt.s32.totalorder %s66_s18, %s66_s18 }
  0x4c   :  { %p894_p7 = scmp.ne.s32.totalorder %s66_s18, %s893_s12  ;;  %p899_p9 = scmp.lt.s32.totalorder %s893_s12, %s893_s12 }
  0x4e   :  { %p900_p10 = por %p899_p9, %p898_p8 }
  0x50   :  { %p901_p11 = pnand %p900_p10, %p894_p7 }
  0x52   :  { %904 = shalt.err (!%p901_p11)
}
  0x53   :  { %71 = dma.hbm_to_vmem [thread:$0]  %s1174_s4, 384, %s66_s18, [#allocation9], %s938_s24, %s938_s24, %s939_s25  }
  0x54   :  { %927 = dma.done.wait [#allocation3], 1024  }
  0x55   :  { %928 = vsyncadd [#allocation3], 4294966272 }
  0x56   :  { %929 = dma.done.wait [#allocation6], 256  }
  0x57   :  { %930 = vsyncadd [#allocation6], 4294967040 }
  0x58   :  { %931 = dma.done.wait [#allocation9], 896  }
  0x59   :  { %932 = vsyncadd [#allocation9], 4294966400  ;;  %vm103_vm0 = vcmask 261120   ;;  %v99_v0 = vld [vmem:[#allocation8] sm:$0xff]  ;;  %v100_v1 = vld [vmem:[#allocation8 + $0x8] sm:$0xff]  ;;  %v942_v13 = vmov 0.0|0.0   ;;  %v323_v23 = vlaneseq }
  0x5a   :  { %v101_v2 = vld [vmem:[#allocation8 + $0x10] sm:$0xff]  ;;  %v748_v3 = vpack.c.bf16 %v100_v1, %v99_v0  ;;  %v102_v4 = vld [vmem:[#allocation8 + $0x18] sm:$0xff]  ;;  %v1056_v5 = vld [vmem:[#allocation2 + $0x30] sm:$0xff]  ;;  %vm943_vm1 = vmmov 0   ;;  %v944_v15 = vmov 0.0   ;;  %vm244_vm2 = vcmask 195584  }
  0x5b   :  { %v752_v6 = vpack.c.bf16 %v102_v4, %v101_v2  ;;  %736 = vmatprep.mubr.msk.f32.mxu1 %vm103_vm0, %v1056_v5  ;;  %v1060_v7 = vld [vmem:[#allocation2] sm:$0xff]  ;;  %v234_v8 = vld [vmem:[#allocation10] sm:$0xff]  ;;  %v235_v9 = vld [vmem:[#allocation10 + $0x8] sm:$0xff]  ;;  %v945_v21 = vmov 1966171168   ;;  %v1089_v28 = vshrl.u32 %v323_v23, 7 }
  0x5c   :  { %759 = vmatprep.subr.bf16.mxu1 %v748_v3  ;;  %749 = vmatprep.subr.bf16.mxu0 %v748_v3  ;;  %v1064_v10 = vld [vmem:[#allocation2 + $0x38] sm:$0xff]  ;;  %v757_v11 = vpack.c.bf16 %v235_v9, %v234_v8  ;;  %v1066_v12 = vld [vmem:[#allocation2 + $0x8] sm:$0xff]  ;;  %v1068_v14 = vld [vmem:[#allocation2 + $0x10] sm:$0xff]  ;;  %v321_v22 = vunpack.c.l.s4 %v945_v21  ;;  %vm507_vm3 = vcmask 1041409   ;;  %vm509_vm4 = vcmask 1042434  }
  0x5d   :  { %761 = vmatpush3.bf16.msra.mxu1 %v748_v3  ;;  %751 = vmatpush3.bf16.msra.mxu0 %v748_v3  ;;  %v1074_v16 = vld [vmem:[#allocation2 + $0x18] sm:$0xff]  ;;  %v236_v17 = vld [vmem:[#allocation10 + $0x10] sm:$0xff]  ;;  %v1084_v20 = vld [vmem:[#allocation2 + $0x28] sm:$0xff]  ;;  %v1096_v40 = vsub.s32 0, %v1089_v28  ;;  %vm511_vm5 = vcmask 1043459   ;;  %vm513_vm6 = vcmask 1044484  }
  0x5e   :  { %760 = vmatprep.subr.bf16.mxu1 %v752_v6  ;;  %753 = vmatprep.subr.bf16.mxu0 %v752_v6  ;;  %v1078_v18 = vld [vmem:[#allocation2 + $0x20] sm:$0xff]  ;;  %v322_v27 = vunpack.c.0.s8 %v321_v22  ;;  %vm515_vm7 = vcmask 1045509   ;;  %vm517_vm8 = vcmask 1046534   ;;  %vm519_vm9 = vcmask 1047559  }
  0x5f   :  { %727 = vmatprep.mubr.msk.f32.mxu0 %vm103_vm0, %v1060_v7  ;;  %v233_v19 = vld [vmem:[#allocation5] sm:$0xff]  ;;  %vm523_vm11 = vcmask 64512  }
  0x60   :  { %v700_v30 = vld [vmem:[%s1175_s5] ss:$0 sm:$0xff]  ;;  %v325_v32 = vsub.s32 %v322_v27, %v1089_v28 }
  0x61   :  { %762 = vmatpush3.bf16.msra.mxu1 %v752_v6  ;;  %755 = vmatpush3.bf16.msra.mxu0 %v752_v6  ;;  %v702_v6 = vld [vmem:[%s1176_s6] ss:$0 sm:$0xff]  ;;  %s946_s6 = smov [#allocation11]  }
  0x62   :  { %756 = vmatprep.subr.bf16.mxu1 %v942_v13  ;;  %s681_s13 = sshll.u32 %s946_s6, 4  ;;  %s682_s13 = int_to_ptr.vmem [resolvable:$true] %s681_s13 }
  0x63   :  { %s905_s14 = scalar_lea.vmem %s682_s13, 128  ;;  %p910_p13 = scmp.lt.s32.totalorder %s682_s13, %s682_s13 }
  0x64   :  { %737 = vmatmul.mubr.msk.f32.vlgmr.msra.gmra.mrb[0].mxu1 %vm103_vm0, %v1064_v10  ;;  %728 = vmatmul.mubr.msk.f32.vlgmr.msra.gmra.mrb[0].mxu0 %vm103_vm0, %v1066_v12  ;;  %p906_p12 = scmp.ne.s32.totalorder %s682_s13, %s905_s14  ;;  %p911_p0 = scmp.lt.s32.totalorder %s905_s14, %s905_s14 }
  0x65   :  { %758 = vmatpush3.bf16.msra.mxu1 %v757_v11  ;;  %745 = vmatprep.mubr.msk.f32.mxu1 %vm943_vm1, %v944_v15 }
  0x66   :  { %743 = vmatprep.subr.mxu1 %v944_v15  ;;  %730 = vmatprep.mubr.msk.f32.mxu0 %vm103_vm0, %v1068_v14  ;;  %p912_p1 = por %p911_p0, %p910_p13 }
  0x68   :  { %731 = vmatmul.mubr.msk.f32.gmra.mrb[2].mxu0 %vm103_vm0, %v1074_v16  ;;  %p913_p2 = pnand %p912_p1, %p906_p12 }
  0x69   :  { %744 = vmatpush3.msra.mxu1 %v236_v17  ;;  %733 = vmatprep.mubr.msk.f32.mxu0 %vm103_vm0, %v1078_v18 }
  0x6a   :  { %746 = vmatmul.mubr.msk.f32.vlgmr.msra.gmra.mrb[2].mxu1 %vm244_vm2, %v233_v19 }
  0x6c   :  { %734 = vmatmul.mubr.msk.f32.gmra.mrb[4].mxu0 %vm103_vm0, %v1084_v20 }
 0x137   :  { %v738_v24 = vpop.f32.mrb[0].mxu1  ;;  %v729_v25 = vpop.f32.mrb[0].mxu0 }
 0x138   :  { %v224_v26 = vpop.f32.mrb[1].mxu1  ;;  %v194_v29 = vpop.f32.mrb[1].mxu0 }
 0x13b   :  { %v732_v31 = vpop.f32.mrb[2].mxu0 }
 0x13c   :  { %v204_v33 = vpop.f32.mrb[3].mxu0 }
 0x13d   :  { %v314_v34 = vpop.f32.mrb[2].mxu1 }
 0x13e   :  { %v315_v35 = vadd.f32 %v700_v30, %v314_v34  ;;  %v747_v36 = vpop.f32.mrb[3].mxu1 }
 0x13f   :  { %v735_v37 = vpop.f32.mrb[4].mxu0 }
 0x140   :  { %v319_v38 = vcombine.high %v315_v35, %v315_v35  ;;  %v326_v39 = vrot.slane %v315_v35, %v325_v32  ;;  %v214_v41 = vpop.f32.mrb[5].mxu0 }
 0x142   :  { %v333_v42 = vrot.slane %v319_v38, %v325_v32  ;;  %v334_v43 = vcombine.high %v326_v39, %v326_v39  ;;  %v342_v44 = vrot.slane %v326_v39, %v325_v32 }
 0x144   :  { %v356_v45 = vrot.slane %v334_v43, %v325_v32  ;;  %v371_v46 = vrot.slane %v342_v44, %v1096_v40  ;;  %v364_v47 = vcombine.high %v342_v44, %v342_v44  ;;  %v335_v48 = vcombine.high %v333_v42, %v333_v42 }
 0x145   :  { %v349_v49 = vrot.slane %v333_v42, %v325_v32 }
 0x146   :  { %v375_v50 = vrot.slane %v356_v45, %v1096_v40  ;;  %v408_v51 = vadd.f32 %v371_v46, %v194_v29  ;;  %v366_v52 = vcombine.high %v356_v45, %v356_v45  ;;  %v379_v53 = vrot.slane %v364_v47, %v1096_v40 }
 0x147   :  { %v363_v54 = vrot.slane %v335_v48, %v325_v32  ;;  %v365_v55 = vcombine.high %v349_v49, %v349_v49  ;;  %v387_v56 = vrot.slane %v349_v49, %v1096_v40 }
 0x148   :  { %v409_v57 = vadd.f32 %v729_v25, %v375_v50  ;;  %775 = vtanh.f32 %v408_v51  ;;  %v383_v58 = vrot.slane %v366_v52, %v1096_v40  ;;  %v410_v59 = vadd.f32 %v379_v53, %v204_v33 }
 0x149   :  { %v367_v60 = vcombine.high %v363_v54, %v363_v54  ;;  %v391_v61 = vrot.slane %v363_v54, %v1096_v40  ;;  %v395_v62 = vrot.slane %v365_v55, %v1096_v40  ;;  %v412_v63 = vadd.f32 %v387_v56, %v214_v41 }
 0x14a   :  { %777 = vtanh.f32 %v409_v57  ;;  %v411_v0 = vadd.f32 %v732_v31, %v383_v58  ;;  %v474_v41 = vand.u32 127, %v323_v23 }
 0x14b   :  { %779 = vtanh.f32 %v410_v59  ;;  %v399_v1 = vrot.slane %v367_v60, %v1096_v40  ;;  %v413_v2 = vadd.f32 %v735_v37, %v391_v61  ;;  %v414_v3 = vadd.f32 %v395_v62, %v224_v26  ;;  %v463_v60 = vld [vmem:[#allocation7] sm:$0xff] }
 0x14c   :  { %781 = vtanh.f32 %v411_v0  ;;  %v477_v43 = vsub.s32 %v474_v41, %v1089_v28  ;;  %vm464_vm10 = vcmp.ne.f32.partialorder %v463_v60, 0.0 }
 0x14d   :  { %v415_v4 = vadd.f32 %v738_v24, %v399_v1  ;;  %783 = vtanh.f32 %v412_v63 }
 0x14e   :  { %785 = vtanh.f32 %v413_v2 }
 0x14f   :  { %787 = vtanh.f32 %v414_v3 }
 0x150   :  { %789 = vtanh.f32 %v415_v4 }
 0x152   :  { %v776_v8 = vpop.eup %775 }
 0x153   :  { %v431_v9 = vmul.f32 %v776_v8, %v702_v6 }
 0x154   :  { %v778_v11 = vpop.eup %777 }
 0x155   :  { %v780_v13 = vpop.eup %779  ;;  %v439_v15 = vsel %vm103_vm0, %v431_v9, 0.0  ;;  %v432_v17 = vmul.f32 %v778_v11, %v702_v6 }
 0x156   :  { %v782_v19 = vpop.eup %781  ;;  %440 = vadd.xlane.f32.xlu0 %v439_v15  ;;  %v433_v21 = vmul.f32 %v780_v13, %v702_v6 }
 0x157   :  { %v784_v22 = vpop.eup %783  ;;  %v434_v25 = vmul.f32 %v782_v19, %v702_v6  ;;  %v442_v27 = vsel %vm103_vm0, %v432_v17, 0.0 }
 0x158   :  { %v445_v24 = vsel %vm103_vm0, %v433_v21, 0.0  ;;  %v786_v26 = vpop.eup %785  ;;  %v435_v29 = vmul.f32 %v784_v22, %v702_v6  ;;  %v547_v22 = vsub.s32 1, %v1089_v28 }
 0x159   :  { %446 = vadd.xlane.f32.xlu1 %v445_v24  ;;  %v788_v30 = vpop.eup %787  ;;  %v448_v31 = vsel %vm103_vm0, %v434_v25, 0.0  ;;  %v436_v32 = vmul.f32 %v786_v26, %v702_v6 }
 0x15a   :  { %443 = vadd.xlane.f32.xlu0 %v442_v27  ;;  %v790_v33 = vpop.eup %789  ;;  %v451_v34 = vsel %vm103_vm0, %v435_v29, 0.0  ;;  %v437_v35 = vmul.f32 %v788_v30, %v702_v6  ;;  %v554_v27 = vsub.s32 2, %v1089_v28  ;;  %v568_v29 = vsub.s32 4, %v1089_v28 }
 0x15b   :  { %v454_v36 = vsel %vm103_vm0, %v436_v32, 0.0  ;;  %v438_v37 = vmul.f32 %v790_v33, %v702_v6  ;;  %v561_v32 = vsub.s32 3, %v1089_v28  ;;  %v582_v33 = vsub.s32 6, %v1089_v28 }
 0x15c   :  { %v457_v38 = vsel %vm103_vm0, %v437_v35, 0.0 }
 0x15d   :  { %449 = vadd.xlane.f32.xlu1 %v448_v31  ;;  %v460_v39 = vsel %vm103_vm0, %v438_v37, 0.0  ;;  %v589_v37 = vsub.s32 7, %v1089_v28 }
 0x15e   :  { %452 = vadd.xlane.f32.xlu0 %v451_v34 }
 0x161   :  { %455 = vadd.xlane.f32.xlu1 %v454_v36  ;;  %v575_v36 = vsub.s32 5, %v1089_v28 }
 0x162   :  { %458 = vadd.xlane.f32.xlu0 %v457_v38 }
 0x165   :  { %461 = vadd.xlane.f32.xlu1 %v460_v39 }
 0x1e3   :  { %v441_v42 = vpop.xlane.xlu0 %440 }
 0x1e4   :  { %v478_v46 = vrot.slane %v441_v42, %v477_v43 }
 0x1e6   :  { %v447_v44 = vpop.xlane.xlu1 %446 }
 0x1e7   :  { %v444_v45 = vpop.xlane.xlu0 %443  ;;  %v486_v48 = vrot.slane %v447_v44, %v477_v43 }
 0x1e8   :  { %v482_v47 = vrot.slane %v444_v45, %v477_v43 }
 0x1ea   :  { %v508_v49 = vsel %vm507_vm3, %v482_v47, %v478_v46  ;;  %v450_v50 = vpop.xlane.xlu1 %449 }
 0x1eb   :  { %v510_v51 = vsel %vm509_vm4, %v486_v48, %v508_v49  ;;  %v490_v52 = vrot.slane %v450_v50, %v477_v43  ;;  %v453_v53 = vpop.xlane.xlu0 %452 }
 0x1ec   :  { %v494_v23 = vrot.slane %v453_v53, %v477_v43 }
 0x1ed   :  { %v512_v54 = vsel %vm511_vm5, %v490_v52, %v510_v51 }
 0x1ee   :  { %v514_v55 = vsel %vm513_vm6, %v494_v23, %v512_v54  ;;  %v456_v56 = vpop.xlane.xlu1 %455 }
 0x1ef   :  { %v498_v57 = vrot.slane %v456_v56, %v477_v43  ;;  %v459_v58 = vpop.xlane.xlu0 %458 }
 0x1f0   :  { %v502_v59 = vrot.slane %v459_v58, %v477_v43 }
 0x1f1   :  { %v516_v61 = vsel %vm515_vm7, %v498_v57, %v514_v55 }
 0x1f2   :  { %v462_v62 = vpop.xlane.xlu1 %461  ;;  %v518_v63 = vsel %vm517_vm8, %v502_v59, %v516_v61 }
 0x1f3   :  { %v506_v0 = vrot.slane %v462_v62, %v477_v43 }
 0x1f5   :  { %v520_v1 = vsel %vm519_vm9, %v506_v0, %v518_v63 }
 0x1f6   :  { %v522_v2 = vsel %vm464_vm10, %v520_v1, -1e+10 }
 0x1f7   :  { %v524_v3 = vsel %vm523_vm11, %v522_v2, -inf }
 0x1f8   :  { %525 = vmax.xlane.f32.xlu0 %v524_v3 }
 0x285   :  { %v526_v4 = vpop.xlane.xlu0 %525 }
 0x286   :  { %v527_v6 = vsub.f32 %v522_v2, %v526_v4 }
 0x288   :  { %v528_v8 = vmul.f32 1.442695, %v527_v6 }
 0x28a   :  { %791 = vpow2.f32 %v528_v8 }
 0x294   :  { %v792_v9 = vpop.eup %791 }
 0x295   :  { %v530_v11 = vsel %vm523_vm11, %v792_v9, 0.0 }
 0x296   :  { %531 = vadd.xlane.f32.xlu1 %v530_v11 }
 0x323   :  { %v532_v13 = vpop.xlane.xlu1 %531 }
 0x324   :  { %793 = vrcp.f32 %v532_v13 }
 0x32e   :  { %v794_v15 = vpop.eup %793 }
 0x32f   :  { %v534_v17 = vmul.f32 %v794_v15, %v532_v13 }
 0x331   :  { %v535_v19 = vsub.f32 2.0, %v534_v17 }
 0x333   :  { %v536_v21 = vmul.f32 %v794_v15, %v535_v19 }
 0x335   :  { %v537_v24 = vmul.f32 %v792_v9, %v536_v21 }
 0x337   :  { %v548_v25 = vrot.slane %v537_v24, %v547_v22  ;;  %v541_v26 = vrot.slane %v537_v24, %v1096_v40  ;;  %v555_v30 = vrot.slane %v537_v24, %v554_v27  ;;  %v569_v31 = vrot.slane %v537_v24, %v568_v29 }
 0x338   :  { %v562_v34 = vrot.slane %v537_v24, %v561_v32  ;;  %v583_v35 = vrot.slane %v537_v24, %v582_v33  ;;  %v576_v40 = vrot.slane %v537_v24, %v575_v36  ;;  %v590_v38 = vrot.slane %v537_v24, %v589_v37 }
 0x339   :  { %550 = vbcast.lane.b32.xlu1 %v548_v25, 256  ;;  %543 = vbcast.lane.b32.xlu0 %v541_v26, 256 }
 0x33d   :  { %557 = vbcast.lane.b32.xlu1 %v555_v30, 256  ;;  %571 = vbcast.lane.b32.xlu0 %v569_v31, 256 }
 0x341   :  { %564 = vbcast.lane.b32.xlu1 %v562_v34, 256  ;;  %585 = vbcast.lane.b32.xlu0 %v583_v35, 256 }
 0x345   :  { %578 = vbcast.lane.b32.xlu1 %v576_v40, 256 }
 0x349   :  { %592 = vbcast.lane.b32.xlu1 %v590_v38, 256 }
 0x3ab   :  { %v551_v39 = vpop.permute.xlu1 %550  ;;  %v544_v41 = vpop.permute.xlu0 %543 }
 0x3ac   :  { %v595_v42 = vmul.f32 %v551_v39, %v1066_v12  ;;  %v594_v43 = vmul.f32 %v544_v41, %v1060_v7 }
 0x3ae   :  { %v609_v44 = vsel %vm103_vm0, %v595_v42, 0.0  ;;  %v602_v45 = vsel %vm103_vm0, %v594_v43, 0.0 }
 0x3af   :  { %v610_v46 = vrot.slane %v609_v44, 4  ;;  %v603_v47 = vrot.slane %v602_v45, 4  ;;  %v558_v48 = vpop.permute.xlu1 %557  ;;  %v572_v49 = vpop.permute.xlu0 %571 }
 0x3b0   :  { %v596_v50 = vmul.f32 %v558_v48, %v1068_v14  ;;  %v598_v28 = vmul.f32 %v572_v49, %v1078_v18 }
 0x3b1   :  { %v611_v51 = vadd.f32 %v610_v46, %v609_v44  ;;  %v604_v52 = vadd.f32 %v603_v47, %v602_v45 }
 0x3b2   :  { %v616_v53 = vsel %vm103_vm0, %v596_v50, 0.0  ;;  %v630_v12 = vsel %vm103_vm0, %v598_v28, 0.0 }
 0x3b3   :  { %v612_v23 = vrot.slane %v611_v51, 2  ;;  %v605_v7 = vrot.slane %v604_v52, 2  ;;  %v617_v54 = vrot.slane %v616_v53, 4  ;;  %v631_v55 = vrot.slane %v630_v12, 4  ;;  %v565_v56 = vpop.permute.xlu1 %564  ;;  %v586_v57 = vpop.permute.xlu0 %585 }
 0x3b4   :  { %v597_v58 = vmul.f32 %v565_v56, %v1074_v16  ;;  %v600_v59 = vmul.f32 %v586_v57, %v1056_v5 }
 0x3b5   :  { %v613_v60 = vadd.f32 %v612_v23, %v611_v51  ;;  %v618_v14 = vadd.f32 %v617_v54, %v616_v53  ;;  %v632_v61 = vadd.f32 %v631_v55, %v630_v12  ;;  %v606_v18 = vadd.f32 %v605_v7, %v604_v52 }
 0x3b6   :  { %v623_v62 = vsel %vm103_vm0, %v597_v58, 0.0  ;;  %v644_v63 = vsel %vm103_vm0, %v600_v59, 0.0 }
 0x3b7   :  { %v619_v0 = vrot.slane %v618_v14, 2  ;;  %v579_v1 = vpop.permute.xlu1 %578  ;;  %v633_v2 = vrot.slane %v632_v61, 2  ;;  %v624_v3 = vrot.slane %v623_v62, 4  ;;  %v645_v4 = vrot.slane %v644_v63, 4 }
 0x3b8   :  { %v599_v6 = vmul.f32 %v579_v1, %v1084_v20  ;;  %v614_v8 = vrot.slane %v613_v60, 1  ;;  %v607_v16 = vrot.slane %v606_v18, 1 }
 0x3b9   :  { %v620_v9 = vadd.f32 %v619_v0, %v618_v14  ;;  %v625_v11 = vadd.f32 %v624_v3, %v623_v62  ;;  %v646_v5 = vadd.f32 %v645_v4, %v644_v63  ;;  %v634_v21 = vadd.f32 %v633_v2, %v632_v61 }
 0x3ba   :  { %v637_v13 = vsel %vm103_vm0, %v599_v6, 0.0  ;;  %v615_v27 = vadd.f32 %v614_v8, %v613_v60  ;;  %v608_v29 = vadd.f32 %v607_v16, %v606_v18 }
 0x3bb   :  { %v621_v15 = vrot.slane %v620_v9, 1  ;;  %v638_v17 = vrot.slane %v637_v13, 4  ;;  %v593_v19 = vpop.permute.xlu1 %592  ;;  %v626_v22 = vrot.slane %v625_v11, 2  ;;  %v647_v24 = vrot.slane %v646_v5, 2 }
 0x3bc   :  { %v601_v25 = vmul.f32 %v593_v19, %v1064_v10  ;;  %v635_v34 = vrot.slane %v634_v21, 1  ;;  %v666_v38 = vsel %vm507_vm3, %v615_v27, %v608_v29 }
 0x3bd   :  { %v639_v26 = vadd.f32 %v638_v17, %v637_v13  ;;  %v627_v30 = vadd.f32 %v626_v22, %v625_v11  ;;  %v622_v31 = vadd.f32 %v621_v15, %v620_v9  ;;  %v648_v36 = vadd.f32 %v647_v24, %v646_v5 }
 0x3be   :  { %v651_v20 = vsel %vm103_vm0, %v601_v25, 0.0  ;;  %v636_v43 = vadd.f32 %v635_v34, %v634_v21 }
 0x3bf   :  { %v640_v32 = vrot.slane %v639_v26, 2  ;;  %v652_v33 = vrot.slane %v651_v20, 4  ;;  %v628_v35 = vrot.slane %v627_v30, 1  ;;  %v667_v41 = vsel %vm509_vm4, %v622_v31, %v666_v38 }
 0x3c0   :  { %v649_v45 = vrot.slane %v648_v36, 1 }
 0x3c1   :  { %v641_v40 = vadd.f32 %v640_v32, %v639_v26  ;;  %v653_v37 = vadd.f32 %v652_v33, %v651_v20  ;;  %v629_v39 = vadd.f32 %v628_v35, %v627_v30 }
 0x3c2   :  { %v650_v28 = vadd.f32 %v649_v45, %v648_v36 }
 0x3c3   :  { %v642_v10 = vrot.slane %v641_v40, 1  ;;  %v654_v42 = vrot.slane %v653_v37, 2  ;;  %v668_v44 = vsel %vm511_vm5, %v629_v39, %v667_v41 }
 0x3c4   :  { %v669_v48 = vsel %vm513_vm6, %v636_v43, %v668_v44 }
 0x3c5   :  { %v643_v46 = vadd.f32 %v642_v10, %v641_v40  ;;  %v655_v47 = vadd.f32 %v654_v42, %v653_v37 }
 0x3c7   :  { %v656_v49 = vrot.slane %v655_v47, 1  ;;  %v670_v50 = vsel %vm515_vm7, %v643_v46, %v669_v48 }
 0x3c8   :  { %v671_v52 = vsel %vm517_vm8, %v650_v28, %v670_v50 }
 0x3c9   :  { %v657_v51 = vadd.f32 %v656_v49, %v655_v47 }
 0x3cb   :  { %v672_v53 = vsel %vm519_vm9, %v657_v51, %v671_v52 }
 0x3cc   :  { %674 = vst.msk [vmem:[#allocation11] sm:$0xff] %vm103_vm0, %v672_v53 }
 0x3cd   :  { %916 = shalt.err (!%p913_p2)
}
 0x3ce   :  { %s917_s18 = scalar_lea.hbm %s1177_s7, 128 }
 0x3cf   :  { %p918_p3 = scmp.ne.s32.totalorder %s1177_s7, %s917_s18  ;;  %p921_p4 = scmp.lt.u32.totalorder %s917_s18, %s1177_s7 }
 0x3d1   :  { %p923_p5 = pnand %p921_p4, %p918_p3 }
 0x3d3   :  { %926 = shalt.err (!%p923_p5)
}
 0x3d4   :  { %684 = dma.vmem_to_hbm [thread:$0]  %s682_s13, 128, %s1177_s7, [#allocation4]  }
 0x3d5   :  { %933 = dma.done.wait [#allocation4], 128  }
 0x3d6   :  { %934 = vsyncadd [#allocation4], 4294967168 }
 0x3d7   :  { %688 = vsyncpa [#allocation3], 1 }
 0x3d8   :  { %689 = vsyncpa [#allocation6], 1 }
 0x3d9   :  { %690 = vsyncpa [#allocation9], 1 }
 0x3da   :  { %691 = vsyncpa [#allocation4], 1 }

</bundles_post_ra>
